<compile_context>
chip_gen: v7x
topology: tpu7x:2x2x1
jax: 0.10.0
libtpu: 0.0.40
codegen_flags: <defaults>
</compile_context>

<pallas_src>
import jax
import jax.numpy as jnp
from jax.experimental import pallas as pl
from jax.experimental.pallas import tpu as pltpu

LANES = 128


# ----------------------------- Pallas kernel --------------------------------
def _sphere_sdf_kernel(c_ref, r_ref, x_ref, o_ref):
    """o = sqrt((x-cx)^2 + (y-cy)^2 + (z-cz)^2) - r for one (tm, 128) tile.

    c_ref: SMEM (3,)   center
    r_ref: SMEM (1,)   radius
    x_ref: VMEM (3, tm, 128)  SoA point tile (x / y / z planes)
    o_ref: VMEM (tm, 128)     signed distances
    """
    dx = x_ref[0] - c_ref[0]                       # (tm, 128) — VPU elementwise
    dy = x_ref[1] - c_ref[1]
    dz = x_ref[2] - c_ref[2]
    dist = jnp.sqrt(dx * dx + dy * dy + dz * dz)   # EUP sqrt, fully dense
    o_ref[...] = (dist - r_ref[0]).astype(o_ref.dtype)


# ------------------------------- wrapper -------------------------------------
def sphere_sdf(points, center, radius, *, tm=2048):
    """Pallas-backed SphereSDF forward.

    points: (..., 3) float  (flattened to (-1, 3) like the PyTorch module)
    center: (1, 3) or (3,) float
    radius: scalar or (1,) float
    returns: (N, 1) float32 signed distances, N = prod(points.shape[:-1]).
    """
    pts = jnp.asarray(points, jnp.float32).reshape(-1, 3)
    N = pts.shape[0]
    c = jnp.asarray(center, jnp.float32).reshape(-1)[:3]      # (3,) SMEM scalar
    r = jnp.asarray(radius, jnp.float32).reshape(-1)[:1]      # (1,) SMEM scalar

    # Pad N up to a multiple of the 128-lane width only (<= 127 dummy points;
    # their sqrt is finite and the rows are stripped afterwards).
    n_pad = pl.cdiv(N, LANES) * LANES
    if n_pad != N:
        pts = jnp.pad(pts, ((0, n_pad - N), (0, 0)))
    M = n_pad // LANES

    # SoA layout (3, M, 128): both sublane and lane axes of every block are
    # dense.  TODO(synk): if the producer can emit points in this layout
    # directly, this single transpose pass over HBM disappears as well.
    x_soa = jnp.transpose(pts.reshape(M, LANES, 3), (2, 0, 1))

    # Tile the sublane (M) axis.  Cap at M so tiny inputs use one exact-fit
    # block (block dim == full array dim is always layout-legal); for large M
    # the last block may be partial, which Pallas masks automatically.
    tm_eff = min(tm, M)
    grid = (pl.cdiv(M, tm_eff),)

    out = pl.pallas_call(
        _sphere_sdf_kernel,
        out_shape=jax.ShapeDtypeStruct((M, LANES), jnp.float32),
        grid=grid,
        in_specs=[
            pl.BlockSpec(memory_space=pltpu.MemorySpace.SMEM),      # center (3,)
            pl.BlockSpec(memory_space=pltpu.MemorySpace.SMEM),      # radius (1,)
            pl.BlockSpec((3, tm_eff, LANES), lambda i: (0, i, 0)),  # point tile
        ],
        out_specs=pl.BlockSpec((tm_eff, LANES), lambda i: (i, 0)),
        compiler_params=pltpu.CompilerParams(
            dimension_semantics=("parallel",)),
        cost_estimate=pl.CostEstimate(
            flops=9 * N, transcendentals=N, bytes_accessed=16 * N),
    )(c, r, x_soa)

    # (M, 128) row-major flatten matches point order (i = m*128 + lane).
    out = out.reshape(-1, 1)
    if n_pad != N:
        out = out[:N]
    return out


def sphere_sdf_reference(points, center, radius):
    """Pure-JAX reference matching the PyTorch module exactly."""
    pts = jnp.asarray(points, jnp.float32).reshape(-1, 3)
    c = jnp.asarray(center, jnp.float32).reshape(1, 3)
    r = jnp.asarray(radius, jnp.float32).reshape(())
    return jnp.linalg.norm(pts - c, axis=-1, keepdims=True) - r


# --------------------------------- main ---------------------------------------
if __name__ == "__main__":
    key = jax.random.PRNGKey(0)
    k1, k2 = jax.random.split(key)

    center = jnp.array([[0.25, -0.1, 0.3]], dtype=jnp.float32)   # (1, 3) like module
    radius = jnp.array([1.0], dtype=jnp.float32)                 # scalar radius

    # TODO(synk): forward pass only; the PyTorch autograd path (parameter
    # gradients for center/radius) is not implemented here.

    # Case 1: small module-consistent grid of points, N = 2*8*8 = 128.
    points1 = jax.random.normal(k1, (2, 8, 8, 3), jnp.float32) * 2.0
    out1 = jax.block_until_ready(sphere_sdf(points1, center, radius))
    ref1 = sphere_sdf_reference(points1, center, radius)
    assert out1.shape == (2 * 8 * 8, 1), out1.shape
    assert jnp.allclose(out1, ref1, atol=1e-5, rtol=1e-5), "mismatch (case 1)"

    # Case 2: ragged N (not a multiple of 128) exercises the padding path.
    points2 = jax.random.normal(k2, (1000, 3), jnp.float32) * 3.0
    out2 = jax.block_until_ready(sphere_sdf(points2, center, radius))
    ref2 = sphere_sdf_reference(points2, center, radius)
    assert out2.shape == (1000, 1), out2.shape
    assert jnp.allclose(out2, ref2, atol=1e-5, rtol=1e-5), "mismatch (case 2)"

    print("KERNEL_OK")
</pallas_src>

<mosaic_0001>
module attributes {stable_mosaic.version = 11 : i64} {
  func.func @_sphere_sdf_kernel(%arg0: i32, %arg1: memref<3xf32, #tpu.memory_space<smem>>, %arg2: memref<1xf32, #tpu.memory_space<smem>>, %arg3: memref<3x1x128xf32, #tpu.memory_space<vmem>>, %arg4: memref<1x128xf32, #tpu.memory_space<vmem>>) attributes {dimension_semantics = [#tpu.dimension_semantics<parallel>], iteration_bounds = array<i64: 1>, scalar_prefetch = 0 : i64, scratch_operands = 0 : i64, tpu.core_type = #tpu.core_type<tc>, window_params = [{transform_indices = @transform_0, window_bounds = array<i64: 3>}, {transform_indices = @transform_1, window_bounds = array<i64: 1>}, {transform_indices = @transform_2, window_bounds = array<i64: 3, 1, 128>}, {transform_indices = @transform_3, window_bounds = array<i64: 1, 128>}]} {
    %c0 = arith.constant 0 : index
    %c0_0 = arith.constant 0 : index
    %c0_1 = arith.constant 0 : index
    %0 = vector.load %arg3[%c0, %c0_0, %c0_1] : memref<3x1x128xf32, #tpu.memory_space<vmem>>, vector<1x1x128xf32>
    %1 = vector.shape_cast %0 : vector<1x1x128xf32> to vector<1x128xf32>
    %c0_2 = arith.constant 0 : index
    %2 = memref.load %arg1[%c0_2] : memref<3xf32, #tpu.memory_space<smem>>
    %3 = vector.broadcast %2 : f32 to vector<1x128xf32>
    %4 = arith.subf %1, %3 : vector<1x128xf32>
    %c1 = arith.constant 1 : index
    %c0_3 = arith.constant 0 : index
    %c0_4 = arith.constant 0 : index
    %5 = vector.load %arg3[%c1, %c0_3, %c0_4] : memref<3x1x128xf32, #tpu.memory_space<vmem>>, vector<1x1x128xf32>
    %6 = vector.shape_cast %5 : vector<1x1x128xf32> to vector<1x128xf32>
    %c1_5 = arith.constant 1 : index
    %7 = memref.load %arg1[%c1_5] : memref<3xf32, #tpu.memory_space<smem>>
    %8 = vector.broadcast %7 : f32 to vector<1x128xf32>
    %9 = arith.subf %6, %8 : vector<1x128xf32>
    %c2 = arith.constant 2 : index
    %c0_6 = arith.constant 0 : index
    %c0_7 = arith.constant 0 : index
    %10 = vector.load %arg3[%c2, %c0_6, %c0_7] : memref<3x1x128xf32, #tpu.memory_space<vmem>>, vector<1x1x128xf32>
    %11 = vector.shape_cast %10 : vector<1x1x128xf32> to vector<1x128xf32>
    %c2_8 = arith.constant 2 : index
    %12 = memref.load %arg1[%c2_8] : memref<3xf32, #tpu.memory_space<smem>>
    %13 = vector.broadcast %12 : f32 to vector<1x128xf32>
    %14 = arith.subf %11, %13 : vector<1x128xf32>
    %15 = arith.mulf %4, %4 : vector<1x128xf32>
    %16 = arith.mulf %9, %9 : vector<1x128xf32>
    %17 = arith.addf %15, %16 : vector<1x128xf32>
    %18 = arith.mulf %14, %14 : vector<1x128xf32>
    %19 = arith.addf %17, %18 : vector<1x128xf32>
    %20 = math.sqrt %19 : vector<1x128xf32>
    %c0_9 = arith.constant 0 : index
    %21 = memref.load %arg2[%c0_9] : memref<1xf32, #tpu.memory_space<smem>>
    %22 = vector.broadcast %21 : f32 to vector<1x128xf32>
    %23 = arith.subf %20, %22 : vector<1x128xf32>
    %c0_10 = arith.constant 0 : index
    %c0_11 = arith.constant 0 : index
    %24 = vector.load %arg4[%c0_10, %c0_11] : memref<1x128xf32, #tpu.memory_space<vmem>>, vector<1x128xf32>
    tpu.vector_store %arg4[%c0_10, %c0_11], %23 {strides = array<i32>} : memref<1x128xf32, #tpu.memory_space<vmem>>, vector<1x128xf32>,
    return
  }
  func.func @transform_0(%arg0: i32) -> i32 {
    %c0_i32 = arith.constant 0 : i32
    %c0_i32_0 = arith.constant 0 : i32
    return %c0_i32 : i32
  }
  func.func @transform_1(%arg0: i32) -> i32 {
    %c0_i32 = arith.constant 0 : i32
    %c0_i32_0 = arith.constant 0 : i32
    return %c0_i32 : i32
  }
  func.func @transform_2(%arg0: i32) -> (i32, i32, i32) {
    %c0_i32 = arith.constant 0 : i32
    %c0_i32_0 = arith.constant 0 : i32
    %c0_i32_1 = arith.constant 0 : i32
    return %c0_i32, %arg0, %c0_i32_0 : i32, i32, i32
  }
  func.func @transform_3(%arg0: i32) -> (i32, i32) {
    %c0_i32 = arith.constant 0 : i32
    %c0_i32_0 = arith.constant 0 : i32
    return %arg0, %c0_i32 : i32, i32
  }
}

</mosaic_0001>

<bundles_post_ra>
// kernel: tpu_custom_call.1
= control target key start
LH: loop header
LB: loop body
LE: loop exit
PB: predicated region body
PF: predicated region fallthrough
CT: control target
= control target key end

     0   :  { %9 = vsyncpa [#allocation5], 0  ;;  %s169_s0 = inlined_call_operand.vmem [shape: f32[3], index: 0, kind: input, shape index: {}]   ;;  %s170_s1 = inlined_call_operand.<no memory space> [shape: f32[1], index: 1, kind: input, shape index: {}]   ;;  %s171_s2 = inlined_call_operand.vmem [shape: f32[3,1,128], index: 2, kind: input, shape index: {}]   ;;  %s172_s3 = inlined_call_operand.hbm [shape: f32[1,128], index: 3, kind: output, shape index: {}]  }
   0x1   :  { %10 = vsyncpa [#allocation4], 0  ;;  %s17_s14 = sshll.u32 %s169_s0, 4  ;;  %s18_s14 = int_to_ptr.vmem [resolvable:$true] %s17_s14 }
   0x2   :  { %s82_s15 = scalar_lea.vmem %s18_s14, 16  ;;  %p87_p1 = scmp.lt.s32.totalorder %s18_s14, %s18_s14 }
   0x3   :  { %p83_p0 = scmp.ne.s32.totalorder %s18_s14, %s82_s15  ;;  %p88_p2 = scmp.lt.s32.totalorder %s82_s15, %s82_s15 }
   0x5   :  { %p89_p3 = por %p88_p2, %p87_p1 }
   0x7   :  { %p90_p4 = pnand %p89_p3, %p83_p0 }
   0x9   :  { %93 = shalt.err (!%p90_p4)
}
   0xa   :  { %s120_s16 = smov [#allocation3]  }
   0xb   :  { %20 = dma.vmem_to_smem %s18_s14, 16, %s120_s16, [#allocation5]  }
   0xc   :  { %116 = dma.done.wait [#allocation5], 16  }
   0xd   :  { %117 = vsyncadd [#allocation5], 4294967280 }
   0xe   :  { %28 = sfence }
   0xf   :  { %s30_s17 = sld [smem:[#allocation3]]  ;;  %s75_s18 = sld [smem:[#allocation3 + $0x1]]  ;;  %v29_v0 = vld [vmem:[%s171_s2] sm:$0x1]  ;;  %v74_v1 = vld [vmem:[%s171_s2 + $0x1] sm:$0x1]  ;;  %v56_v17 = vstv %s170_s1 }
  0x10   :  { %s77_s19 = sld [smem:[#allocation3 + $0x2]]  ;;  %v76_v2 = vld [vmem:[%s171_s2 + $0x2] sm:$0x1]  ;;  %s121_s2 = smov [#allocation6]  }
  0x11   :  { %s65_s27 = sshll.u32 %s121_s2, 4  ;;  %s66_s27 = int_to_ptr.vmem [resolvable:$true] %s65_s27 }
  0x12   :  { %s94_s28 = scalar_lea.vmem %s66_s27, 16  ;;  %s98_s29 = scalar_lea.vmem %s66_s27, 32 }
  0x13   :  { %p95_p5 = scmp.ne.s32.totalorder %s66_s27, %s94_s28  ;;  %p99_p6 = scmp.lt.s32.totalorder %s66_s27, %s66_s27 }
  0x14   :  { %p100_p7 = scmp.lt.s32.totalorder %s98_s29, %s94_s28 }
  0x15   :  { %v31_v3 = vstv %s30_s17  ;;  %v36_v5 = vstv %s75_s18 }
  0x16   :  { %v32_v4 = vsub.f32 %v29_v0, %v31_v3  ;;  %v41_v6 = vstv %s77_s19  ;;  %v37_v7 = vsub.f32 %v74_v1, %v36_v5  ;;  %p101_p8 = por %p100_p7, %p99_p6 }
  0x17   :  { %v42_v8 = vsub.f32 %v76_v2, %v41_v6 }
  0x18   :  { %v43_v9 = vmul.f32 %v32_v4, %v32_v4  ;;  %v44_v10 = vmul.f32 %v37_v7, %v37_v7  ;;  %p102_p9 = pnand %p101_p8, %p95_p5 }
  0x19   :  { %v46_v11 = vmul.f32 %v42_v8, %v42_v8 }
  0x1a   :  { %v45_v12 = vadd.f32 %v44_v10, %v43_v9 }
  0x1c   :  { %v47_v13 = vadd.f32 %v46_v11, %v45_v12 }
  0x1e   :  { %80 = vrsqrt.f32 %v47_v13  ;;  %vm50_vm0 = vcmp.eq.f32.partialorder %v47_v13, inf  ;;  %v53_v15 = vand.u32 2147483648, %v47_v13  ;;  %vm52_vm1 = vcmp.eq.f32.partialorder %v47_v13, 0.0 }
  0x28   :  { %v81_v14 = vpop.eup %80 }
  0x29   :  { %v49_v16 = vmul.f32 %v81_v14, %v47_v13 }
  0x2b   :  { %v51_v18 = vsel %vm50_vm0, %v47_v13, %v49_v16 }
  0x2c   :  { %v54_v19 = vsel %vm52_vm1, %v53_v15, %v51_v18 }
  0x2d   :  { %v57_v20 = vsub.f32 %v54_v19, %v56_v17 }
  0x2f   :  { %58 = vst [vmem:[#allocation6] sm:$0x1] %v57_v20 }
  0x30   :  { %105 = shalt.err (!%p102_p9)
}
  0x31   :  { %s106_s5 = scalar_lea.hbm %s172_s3, 16 }
  0x32   :  { %p107_p10 = scmp.ne.s32.totalorder %s172_s3, %s106_s5  ;;  %p110_p11 = scmp.lt.u32.totalorder %s106_s5, %s172_s3 }
  0x34   :  { %p112_p12 = pnand %p110_p11, %p107_p10 }
  0x36   :  { %115 = shalt.err (!%p112_p12)
}
  0x37   :  { %68 = dma.vmem_to_hbm [thread:$0]  %s66_s27, 16, %s172_s3, [#allocation4]  }
  0x38   :  { %118 = dma.done.wait [#allocation4], 16  }
  0x39   :  { %119 = vsyncadd [#allocation4], 4294967280 }
  0x3a   :  { %72 = vsyncpa [#allocation4], 1 }
  0x3b   :  { %73 = vsyncpa [#allocation5], 1 }

</bundles_post_ra>
